<compile_context>
chip_gen: v7x
topology: tpu7x:2x2x1
jax: 0.10.0
libtpu: 0.0.40
codegen_flags: <defaults>
</compile_context>

<pallas_src>
import functools
from typing import NamedTuple

import numpy as np
import jax
import jax.numpy as jnp
from jax.experimental import pallas as pl
from jax.experimental.pallas import tpu as pltpu


# ----------------------------- parameter packing -----------------------------

class PackedMeta(NamedTuple):
    state: int
    hidden: int
    action: int
    r_b1: int
    r_w2: int
    r_b2: int
    r_w3: int
    r_b3: int
    rows: int
    width: int


def _round_up(n, m):
    return ((n + m - 1) // m) * m


def init_dqn_params(key, state_size, action_size, hidden=24):
    """PyTorch nn.Linear default init. Weights (out, in), biases (out,)."""
    def linear(k, fan_in, fan_out):
        kw, kb = jax.random.split(k)
        bound = 1.0 / float(np.sqrt(fan_in))
        w = jax.random.uniform(kw, (fan_out, fan_in), jnp.float32, -bound, bound)
        b = jax.random.uniform(kb, (fan_out,), jnp.float32, -bound, bound)
        return w, b

    k1, k2, k3 = jax.random.split(key, 3)
    w1, b1 = linear(k1, state_size, hidden)
    w2, b2 = linear(k2, hidden, hidden)
    w3, b3 = linear(k3, hidden, action_size)
    return {"w1": w1, "b1": b1, "w2": w2, "b2": b2, "w3": w3, "b3": b3}


def pack_params(params):
    """Pack all 6 tensors into one (rows, width) f32 slab (done once, host side).

    Layout (each section starts on a multiple-of-8 row so kernel slices are
    sublane aligned): w1^T | b1 | w2^T | b2 | w3^T | b3.  w stored (in, out).
    """
    w1, b1 = np.asarray(params["w1"], np.float32), np.asarray(params["b1"], np.float32)
    w2, b2 = np.asarray(params["w2"], np.float32), np.asarray(params["b2"], np.float32)
    w3, b3 = np.asarray(params["w3"], np.float32), np.asarray(params["b3"], np.float32)
    H, S = w1.shape
    A = w3.shape[0]
    width = max(H, A)

    r_w1 = 0
    r_b1 = _round_up(S, 8)
    r_w2 = r_b1 + 8
    r_b2 = r_w2 + _round_up(H, 8)
    r_w3 = r_b2 + 8
    r_b3 = r_w3 + _round_up(H, 8)
    rows = r_b3 + 8

    buf = np.zeros((rows, width), np.float32)

    def put(r, arr):
        buf[r:r + arr.shape[0], :arr.shape[1]] = arr

    put(r_w1, w1.T)                 # (S, H)
    put(r_b1, b1.reshape(1, -1))    # (1, H)
    put(r_w2, w2.T)                 # (H, H)
    put(r_b2, b2.reshape(1, -1))    # (1, H)
    put(r_w3, w3.T)                 # (H, A)
    put(r_b3, b3.reshape(1, -1))    # (1, A)

    meta = PackedMeta(S, H, A, r_b1, r_w2, r_b2, r_w3, r_b3, rows, width)
    return jnp.asarray(buf), meta


# --------------------------------- kernels -----------------------------------

def _dqn_mlp(meta, x, p_ref):
    """3-layer MLP on a (TB, S) tile; batch on sublanes, features on lanes."""
    S, H, A = meta.state, meta.hidden, meta.action
    w1t = p_ref[0:S, 0:H]                              # (S, H)
    b1 = p_ref[meta.r_b1:meta.r_b1 + 1, 0:H]           # (1, H)
    w2t = p_ref[meta.r_w2:meta.r_w2 + H, 0:H]          # (H, H)
    b2 = p_ref[meta.r_b2:meta.r_b2 + 1, 0:H]           # (1, H)
    w3t = p_ref[meta.r_w3:meta.r_w3 + H, 0:A]          # (H, A)
    b3 = p_ref[meta.r_b3:meta.r_b3 + 1, 0:A]           # (1, A)

    h1 = jnp.maximum(jnp.dot(x, w1t, preferred_element_type=jnp.float32) + b1, 0.0)
    h2 = jnp.maximum(jnp.dot(h1, w2t, preferred_element_type=jnp.float32) + b2, 0.0)
    return jnp.dot(h2, w3t, preferred_element_type=jnp.float32) + b3    # (TB, A)


def dqn_kernel(meta, x_ref, p_ref, o_ref):
    # astype makes bf16-stored replay states work without a wrapper-side cast.
    x = x_ref[...].astype(jnp.float32)
    o_ref[...] = _dqn_mlp(meta, x, p_ref).astype(o_ref.dtype)


def dqn_argmax_kernel(meta, x_ref, p_ref, a_ref):
    # Fused epilogue: greedy action = first argmax over the (tiny) action axis.
    x = x_ref[...].astype(jnp.float32)
    q = _dqn_mlp(meta, x, p_ref)                               # (TB, A)
    best = jnp.max(q, axis=1, keepdims=True)
    ids = jax.lax.broadcasted_iota(jnp.int32, q.shape, 1)
    first_max = jnp.min(jnp.where(q >= best, ids, meta.action), axis=1, keepdims=True)
    a_ref[...] = first_max.astype(jnp.int32)                   # (TB, 1)


# --------------------------------- wrappers -----------------------------------

def dqn_forward(x, packed, meta, *, block_b=8192, single_shot_max=2048):
    """x: (B, state) f32/bf16 -> (B, actions) f32 Q-values."""
    B, S = x.shape
    A = meta.action
    kernel = functools.partial(dqn_kernel, meta)

    if B <= single_shot_max:
        # Tiny-B inference fast path: one invocation, no grid, everything in VMEM.
        return pl.pallas_call(
            kernel,
            out_shape=jax.ShapeDtypeStruct((B, A), jnp.float32),
            in_specs=[pl.BlockSpec((B, S), lambda: (0, 0)),
                      pl.BlockSpec(packed.shape, lambda: (0, 0))],
            out_specs=pl.BlockSpec((B, A), lambda: (0, 0)),
        )(x, packed)

    # Batched (replay-buffer) path: grid over batch tiles, weights resident.
    # Keep >= 2 tiles whenever we take this path so v7x's two TCs both get work.
    block = min(block_b, _round_up(pl.cdiv(B, 2), 256))
    num_tiles = pl.cdiv(B, block)
    return pl.pallas_call(
        kernel,
        out_shape=jax.ShapeDtypeStruct((B, A), jnp.float32),
        grid=(num_tiles,),
        in_specs=[pl.BlockSpec((block, S), lambda i: (i, 0)),
                  pl.BlockSpec(packed.shape, lambda i: (0, 0))],   # resident weights
        out_specs=pl.BlockSpec((block, A), lambda i: (i, 0)),
        compiler_params=pltpu.CompilerParams(
            # TODO(synk): on v7x, if "parallel" does not actually shard batch
            # tiles across the 2 TensorCores, switch to CORE_PARALLEL / core_map.
            dimension_semantics=("parallel",),
            # Explicit limit covers v5e's 16 MiB default and stays well under
            # v7x's 64 MiB physical VMEM at the default block_b.
            vmem_limit_bytes=48 * 1024 * 1024),
    )(x, packed)


def dqn_select_action(x, packed, meta, *, block_b=8192, single_shot_max=2048):
    """Greedy action selection, argmax fused into the kernel for tiny batches."""
    B, S = x.shape
    if B > single_shot_max:
        q = dqn_forward(x, packed, meta, block_b=block_b,
                        single_shot_max=single_shot_max)
        return jnp.argmax(q, axis=-1).astype(jnp.int32)
    a = pl.pallas_call(
        functools.partial(dqn_argmax_kernel, meta),
        out_shape=jax.ShapeDtypeStruct((B, 1), jnp.int32),
        in_specs=[pl.BlockSpec((B, S), lambda: (0, 0)),
                  pl.BlockSpec(packed.shape, lambda: (0, 0))],
        out_specs=pl.BlockSpec((B, 1), lambda: (0, 0)),
    )(x, packed)
    return a.reshape(B)


def dqn_reference(x, p):
    x = x.astype(jnp.float32)
    h1 = jnp.maximum(x @ p["w1"].T + p["b1"], 0.0)
    h2 = jnp.maximum(h1 @ p["w2"].T + p["b2"], 0.0)
    return h2 @ p["w3"].T + p["b3"]


# ----------------------------------- main -------------------------------------

if __name__ == "__main__":
    key = jax.random.PRNGKey(0)
    k_params, k_small, k_big = jax.random.split(key, 3)

    state_size, action_size = 16, 4
    params = init_dqn_params(k_params, state_size, action_size)
    packed, meta = pack_params(params)          # one-time host-side packing

    # Path 1: tiny-B inference (single shot, no grid).
    x_small = jax.random.normal(k_small, (8, state_size), jnp.float32)
    q_small = jax.block_until_ready(dqn_forward(x_small, packed, meta))
    assert q_small.shape == (8, action_size)
    assert jnp.allclose(q_small, dqn_reference(x_small, params), atol=1e-4, rtol=1e-5)

    # Fused greedy-action epilogue on the same tiny batch.
    a_small = jax.block_until_ready(dqn_select_action(x_small, packed, meta))
    assert a_small.shape == (8,)
    assert jnp.array_equal(a_small, jnp.argmax(q_small, axis=1).astype(jnp.int32))

    # Path 2: batched grid path with default tiling (>=2 tiles, ragged last tile,
    # weights resident, no wrapper-side transpose/pad/slice).
    x_big = jax.random.normal(k_big, (2304, state_size), jnp.float32)
    q_big = jax.block_until_ready(dqn_forward(x_big, packed, meta))
    assert q_big.shape == (2304, action_size)
    assert jnp.allclose(q_big, dqn_reference(x_big, params), atol=1e-4, rtol=1e-5)

    # bf16-stored states option (halves x bandwidth on v6e/v7x); the cast here is
    # only to fabricate bf16 test data — real use stores the replay buffer in bf16.
    q_bf16 = jax.block_until_ready(
        dqn_forward(x_big.astype(jnp.bfloat16), packed, meta))
    assert jnp.allclose(q_bf16, dqn_reference(x_big, params), atol=5e-2, rtol=5e-2)

    print("KERNEL_OK")
</pallas_src>

<mosaic_0001>
module attributes {stable_mosaic.version = 11 : i64} {
  func.func @dqn_kernel(%arg0: memref<8x16xf32, #tpu.memory_space<vmem>>, %arg1: memref<88x24xf32, #tpu.memory_space<vmem>>, %arg2: memref<8x4xf32, #tpu.memory_space<vmem>>) attributes {dimension_semantics = [], scalar_prefetch = 0 : i64, scratch_operands = 0 : i64, tpu.core_type = #tpu.core_type<tc>} {
    %c0 = arith.constant 0 : index
    %c0_0 = arith.constant 0 : index
    %0 = vector.load %arg0[%c0, %c0_0] : memref<8x16xf32, #tpu.memory_space<vmem>>, vector<8x16xf32>
    %c0_1 = arith.constant 0 : index
    %c0_2 = arith.constant 0 : index
    %1 = vector.load %arg1[%c0_1, %c0_2] : memref<88x24xf32, #tpu.memory_space<vmem>>, vector<16x24xf32>
    %c16 = arith.constant 16 : index
    %c0_3 = arith.constant 0 : index
    %2 = vector.load %arg1[%c16, %c0_3] : memref<88x24xf32, #tpu.memory_space<vmem>>, vector<1x24xf32>
    %c24 = arith.constant 24 : index
    %c0_4 = arith.constant 0 : index
    %3 = vector.load %arg1[%c24, %c0_4] : memref<88x24xf32, #tpu.memory_space<vmem>>, vector<24x24xf32>
    %c48 = arith.constant 48 : index
    %c0_5 = arith.constant 0 : index
    %4 = vector.load %arg1[%c48, %c0_5] : memref<88x24xf32, #tpu.memory_space<vmem>>, vector<1x24xf32>
    %c56 = arith.constant 56 : index
    %c0_6 = arith.constant 0 : index
    %5 = vector.load %arg1[%c56, %c0_6] : memref<88x24xf32, #tpu.memory_space<vmem>>, vector<24x4xf32>
    %c80 = arith.constant 80 : index
    %c0_7 = arith.constant 0 : index
    %6 = vector.load %arg1[%c80, %c0_7] : memref<88x24xf32, #tpu.memory_space<vmem>>, vector<1x4xf32>
    %cst = arith.constant dense<0.000000e+00> : vector<8x24xf32>
    %7 = tpu.matmul %0, %1, %cst {dimension_numbers = #tpu.dot_dimension_numbers<[1], [0], [0], [1], [0, 0, 1, 1], [], []>} : vector<8x16xf32>, vector<16x24xf32>, vector<8x24xf32> -> vector<8x24xf32>
    %8 = vector.broadcast %2 : vector<1x24xf32> to vector<8x24xf32>
    %9 = arith.addf %7, %8 : vector<8x24xf32>
    %cst_8 = arith.constant 0.000000e+00 : f32
    %10 = vector.broadcast %cst_8 : f32 to vector<8x24xf32>
    %11 = arith.maximumf %9, %10 : vector<8x24xf32>
    %cst_9 = arith.constant dense<0.000000e+00> : vector<8x24xf32>
    %12 = tpu.matmul %11, %3, %cst_9 {dimension_numbers = #tpu.dot_dimension_numbers<[1], [0], [0], [1], [0, 0, 1, 1], [], []>} : vector<8x24xf32>, vector<24x24xf32>, vector<8x24xf32> -> vector<8x24xf32>
    %13 = vector.broadcast %4 : vector<1x24xf32> to vector<8x24xf32>
    %14 = arith.addf %12, %13 : vector<8x24xf32>
    %cst_10 = arith.constant 0.000000e+00 : f32
    %15 = vector.broadcast %cst_10 : f32 to vector<8x24xf32>
    %16 = arith.maximumf %14, %15 : vector<8x24xf32>
    %cst_11 = arith.constant dense<0.000000e+00> : vector<8x4xf32>
    %17 = tpu.matmul %16, %5, %cst_11 {dimension_numbers = #tpu.dot_dimension_numbers<[1], [0], [0], [1], [0, 0, 1, 1], [], []>} : vector<8x24xf32>, vector<24x4xf32>, vector<8x4xf32> -> vector<8x4xf32>
    %18 = vector.broadcast %6 : vector<1x4xf32> to vector<8x4xf32>
    %19 = arith.addf %17, %18 : vector<8x4xf32>
    %c0_12 = arith.constant 0 : index
    %c0_13 = arith.constant 0 : index
    %20 = vector.load %arg2[%c0_12, %c0_13] : memref<8x4xf32, #tpu.memory_space<vmem>>, vector<8x4xf32>
    tpu.vector_store %arg2[%c0_12, %c0_13], %19 {strides = array<i32>} : memref<8x4xf32, #tpu.memory_space<vmem>>, vector<8x4xf32>,
    return
  }
}

</mosaic_0001>

<bundles_post_ra>
// kernel: tpu_custom_call.1
= control target key start
LH: loop header
LB: loop body
LE: loop exit
PB: predicated region body
PF: predicated region fallthrough
CT: control target
= control target key end

     0   :  { %v318_v0 = vmov 0.0|0.0   ;;  %vm319_vm0 = vmmov 0   ;;  %v320_v3 = vmov 0.0   ;;  %vm27_vm1 = vcmask 130048   ;;  %s375_s1 = inlined_call_operand.vmem [shape: f32[88,24], index: 1, kind: input, shape index: {}]   ;;  %s376_s0 = inlined_call_operand.vmem [shape: f32[8,16], index: 0, kind: input, shape index: {}]   ;;  %s377_s2 = inlined_call_operand.vmem [shape: f32[8,4], index: 2, kind: output, shape index: {}]  }
   0x1   :  { %306 = vmatprep.subr.bf16.mxu0 %v318_v0  ;;  %v12_v1 = vld [vmem:[%s375_s1] sm:$0xff]  ;;  %v13_v2 = vld [vmem:[%s375_s1 + $0x8] sm:$0xff]  ;;  %285 = vmatprep.mubr.msk.f32.mxu0 %vm319_vm0, %v320_v3  ;;  %v15_v6 = vld [vmem:[%s375_s1 + $0x18] sm:$0xff]  ;;  %vm106_vm2 = vcmask 195584   ;;  %vm258_vm3 = vcmask 31744  }
   0x2   :  { %v307_v4 = vpack.c.bf16 %v13_v2, %v12_v1  ;;  %309 = vmatprep.subr.bf16.mxu1 %v318_v0  ;;  %294 = vmatprep.mubr.msk.f32.mxu1 %vm319_vm0, %v320_v3  ;;  %v11_v5 = vld [vmem:[%s376_s0] sm:$0xff]  ;;  %v17_v9 = vld [vmem:[%s375_s1 + $0x28] sm:$0xff]  ;;  %v19_v10 = vld [vmem:[%s375_s1 + $0x38] sm:$0xff] }
   0x3   :  { %v16_v7 = vld [vmem:[%s375_s1 + $0x20] sm:$0xff]  ;;  %v264_v13 = vld [vmem:[%s375_s1 + $0x10] ss:$0 sm:$0xff]  ;;  %v21_v18 = vld [vmem:[%s375_s1 + $0x48] sm:$0xff] }
   0x4   :  { %308 = vmatpush3.bf16.msra.mxu0 %v307_v4  ;;  %v310_v8 = vpack.c.bf16 %v16_v7, %v15_v6  ;;  %v20_v11 = vld [vmem:[%s375_s1 + $0x40] sm:$0xff]  ;;  %v266_v19 = vld [vmem:[%s375_s1 + $0x30] ss:$0 sm:$0xff] }
   0x5   :  { %312 = vmatprep.subr.bf16.mxu0 %v318_v0  ;;  %v313_v12 = vpack.c.bf16 %v20_v11, %v19_v10  ;;  %v268_v24 = vld [vmem:[%s375_s1 + $0x50] ss:$0 sm:$0xff] }
   0x6   :  { %311 = vmatpush3.bf16.msra.mxu1 %v310_v8 }
   0x7   :  { %286 = vmatmul.mubr.msk.f32.vlgmr.msra.gmra.mrb[0].mxu0 %vm27_vm1, %v11_v5  ;;  %292 = vmatprep.subr.mxu1 %v320_v3 }
   0x8   :  { %303 = vmatprep.mubr.msk.f32.mxu0 %vm319_vm0, %v320_v3  ;;  %314 = vmatpush3.bf16.msra.mxu0 %v313_v12 }
   0x9   :  { %301 = vmatprep.subr.mxu0 %v320_v3 }
   0xa   :  { %293 = vmatpush3.msra.mxu1 %v17_v9 }
   0xc   :  { %302 = vmatpush3.msra.mxu0 %v21_v18 }
  0xda   :  { %v97_v14 = vpop.f32.mrb[0].mxu0 }
  0xdb   :  { %v98_v15 = vadd.f32 %v264_v13, %v97_v14  ;;  %v287_v16 = vpop.f32.mrb[1].mxu0 }
  0xdd   :  { %v101_v17 = vmax.f32 %v98_v15, 0.0 }
  0xdf   :  { %295 = vmatmul.mubr.msk.f32.vlgmr.msra.gmra.mrb[0].mxu1 %vm106_vm2, %v101_v17 }
 0x1b2   :  { %v176_v20 = vpop.f32.mrb[0].mxu1 }
 0x1b3   :  { %v177_v21 = vadd.f32 %v266_v19, %v176_v20  ;;  %v296_v22 = vpop.f32.mrb[1].mxu1 }
 0x1b5   :  { %v180_v23 = vmax.f32 %v177_v21, 0.0 }
 0x1b7   :  { %304 = vmatmul.mubr.msk.f32.vlgmr.msra.gmra.mrb[2].mxu0 %vm106_vm2, %v180_v23 }
 0x28a   :  { %v254_v25 = vpop.f32.mrb[2].mxu0 }
 0x28b   :  { %v255_v26 = vadd.f32 %v268_v24, %v254_v25  ;;  %v305_v27 = vpop.f32.mrb[3].mxu0 }
 0x28d   :  { %259 = vst.msk [vmem:[%s377_s2] sm:$0xff] %vm258_vm3, %v255_v26 }

</bundles_post_ra>
